<compile_context>
chip_gen: v7x
topology: tpu7x:2x2x1
jax: 0.10.0
libtpu: 0.0.40
codegen_flags: <defaults>
</compile_context>

<pallas_src>
import functools

import jax
import jax.numpy as jnp
import numpy as np
from jax.experimental import pallas as pl
from jax.experimental.pallas import tpu as pltpu

EPS = 1e-5


def _instance_norm(y, hw):
    """Per-channel normalization over the lane (spatial) axis of (C, H*W)."""
    inv_hw = 1.0 / hw                                   # hoisted constant
    s = jnp.sum(y, axis=1, keepdims=True)               # fused single pass:
    ss = jnp.sum(y * y, axis=1, keepdims=True)          # sum and sum-of-squares
    mu = s * inv_hw
    var = jnp.maximum(ss * inv_hw - mu * mu, 0.0)
    return (y - mu) * jax.lax.rsqrt(var + EPS)


def _conv3x3_reflect(v, w_ref, b_ref, masks, H, W, C):
    """3x3 reflect-pad conv of v (C_in, H*W) -> (C_out, H*W) in f32.

    Spatial taps come from the resident tile via pltpu.roll along the flattened
    lane axis plus boundary selects implementing reflect padding -- no padded
    scratch buffer and no per-tap reshape copies.
    """
    hw = H * W
    col0, col_last, row0, row_last = masks

    # Vertical neighbours (kh = 0,1,2 -> source rows h-1, h, h+1, reflected).
    up_wrap = pltpu.roll(v, W, 1)            # v[:, p - W]   (wraps at row 0)
    dn_wrap = pltpu.roll(v, hw - W, 1)       # v[:, p + W]   (wraps at row H-1)
    rows = (
        jnp.where(row0, dn_wrap, up_wrap),        # row -1 -> reflect to row 1
        v,
        jnp.where(row_last, up_wrap, dn_wrap),    # row H  -> reflect to row H-2
    )

    # Accumulate in f32, starting from the broadcast bias (saves a pass).
    acc = jnp.broadcast_to(b_ref[...].astype(jnp.float32), (C, hw))
    for kh in range(3):
        r = rows[kh]
        l_wrap = pltpu.roll(r, 1, 1)         # r[:, p - 1]   (wraps at col 0)
        r_wrap = pltpu.roll(r, hw - 1, 1)    # r[:, p + 1]   (wraps at col W-1)
        cols = (
            jnp.where(col0, r_wrap, l_wrap),       # col -1 -> reflect to col 1
            r,
            jnp.where(col_last, l_wrap, r_wrap),   # col W  -> reflect to col W-2
        )
        for kw in range(3):
            # (C_out, C_in) @ (C_in, H*W): lane-dense MXU output, f32 acc,
            # DEFAULT precision (no multi-pass f32 decomposition).
            acc = acc + jnp.dot(w_ref[kh, kw], cols[kw],
                                preferred_element_type=jnp.float32)
    return acc


def residual_block_kernel(H, W, x_ref, w1_ref, b1_ref, w2_ref, b2_ref,
                          idx_ref, o_ref):
    C = x_ref.shape[1]
    hw = H * W

    col = idx_ref[0:1, :]                    # (1, H*W) column index per pixel
    row = idx_ref[1:2, :]                    # (1, H*W) row index per pixel
    masks = (col == 0, col == W - 1, row == 0, row == H - 1)

    x = x_ref[0].astype(jnp.float32)         # (C, H*W)

    # conv1 -> instance norm -> relu
    y = _conv3x3_reflect(x, w1_ref, b1_ref, masks, H, W, C)
    y = jnp.maximum(_instance_norm(y, hw), 0.0)

    # conv2 -> instance norm
    z = _conv3x3_reflect(y, w2_ref, b2_ref, masks, H, W, C)
    z = _instance_norm(z, hw)

    # residual add (re-read x so it is not kept live across both convs)
    o_ref[0] = (x_ref[0].astype(jnp.float32) + z).astype(o_ref.dtype)


@jax.jit
def residual_block(x_nchw, w1, b1, w2, b2):
    """x_nchw: (N, C, H, W); w: PyTorch-layout (C_out, C_in, 3, 3); b: (C,)."""
    N, C, H, W = x_nchw.shape
    assert H >= 2 and W >= 2, "reflect padding of 1 needs H, W >= 2"
    hw = H * W

    x_flat = x_nchw.reshape(N, C, hw)                 # lane-dense (C, H*W) view
    w1_k = jnp.transpose(w1, (2, 3, 0, 1))            # (3, 3, C_out, C_in)
    w2_k = jnp.transpose(w2, (2, 3, 0, 1))
    b1_k = b1.reshape(C, 1)
    b2_k = b2.reshape(C, 1)

    pix = jnp.arange(hw, dtype=jnp.int32)
    idx = jnp.stack([pix % W, pix // W], axis=0)      # (2, H*W) col/row indices

    out = pl.pallas_call(
        functools.partial(residual_block_kernel, H, W),
        out_shape=jax.ShapeDtypeStruct((N, C, hw), x_nchw.dtype),
        grid=(N,),
        in_specs=[
            pl.BlockSpec((1, C, hw), lambda n: (n, 0, 0)),
            pl.BlockSpec((3, 3, C, C), lambda n: (0, 0, 0, 0)),
            pl.BlockSpec((C, 1), lambda n: (0, 0)),
            pl.BlockSpec((3, 3, C, C), lambda n: (0, 0, 0, 0)),
            pl.BlockSpec((C, 1), lambda n: (0, 0)),
            pl.BlockSpec((2, hw), lambda n: (0, 0)),
        ],
        out_specs=pl.BlockSpec((1, C, hw), lambda n: (n, 0, 0)),
        compiler_params=pltpu.CompilerParams(
            dimension_semantics=("parallel",)),
    )(x_flat, w1_k, b1_k, w2_k, b2_k, idx)
    return out.reshape(N, C, H, W)


def residual_block_reference(x_nchw, w1, b1, w2, b2):
    """Pure-JAX NCHW reference matching the PyTorch module (f32, HIGHEST)."""
    def conv(v, w, b):
        vp = jnp.pad(v, ((0, 0), (0, 0), (1, 1), (1, 1)), mode="reflect")
        y = jax.lax.conv_general_dilated(
            vp, w, window_strides=(1, 1), padding="VALID",
            dimension_numbers=("NCHW", "OIHW", "NCHW"),
            precision=jax.lax.Precision.HIGHEST)
        return y + b.reshape(1, -1, 1, 1)

    def inorm(v):
        mu = v.mean(axis=(2, 3), keepdims=True)
        var = ((v - mu) ** 2).mean(axis=(2, 3), keepdims=True)
        return (v - mu) * jax.lax.rsqrt(var + EPS)

    y = jnp.maximum(inorm(conv(x_nchw, w1, b1)), 0.0)
    z = inorm(conv(y, w2, b2))
    return x_nchw + z


if __name__ == "__main__":
    N, C, H, W = 2, 4, 16, 16
    key = jax.random.PRNGKey(0)
    kx, kw1, kb1, kw2, kb2 = jax.random.split(key, 5)

    # PyTorch-style NCHW input and Conv2d-style init U(-1/sqrt(fan_in), +).
    x = jax.random.normal(kx, (N, C, H, W), dtype=jnp.float32)
    fan_in = C * 3 * 3
    bound = 1.0 / np.sqrt(fan_in)
    w1 = jax.random.uniform(kw1, (C, C, 3, 3), jnp.float32, -bound, bound)
    b1 = jax.random.uniform(kb1, (C,), jnp.float32, -bound, bound)
    w2 = jax.random.uniform(kw2, (C, C, 3, 3), jnp.float32, -bound, bound)
    b2 = jax.random.uniform(kb2, (C,), jnp.float32, -bound, bound)

    out = jax.block_until_ready(residual_block(x, w1, b1, w2, b2))
    ref = residual_block_reference(x, w1, b1, w2, b2)

    assert out.shape == (N, C, H, W)
    assert bool(jnp.all(jnp.isfinite(out)))
    max_err = float(jnp.max(jnp.abs(out - ref)))
    # Kernel matmuls use DEFAULT (single-pass bf16) MXU precision vs. the f32
    # HIGHEST reference, so allow a slightly looser tolerance.
    assert bool(jnp.allclose(out, ref, atol=5e-2, rtol=2e-2)), (
        f"Pallas output mismatch vs JAX reference (max |err| = {max_err:.2e})")

    print("KERNEL_OK")
</pallas_src>

<mosaic_0001>
module attributes {stable_mosaic.version = 11 : i64} {
  func.func @residual_block_kernel(%arg0: i32, %arg1: memref<1x4x256xf32, #tpu.memory_space<vmem>>, %arg2: memref<3x3x4x4xf32, #tpu.memory_space<vmem>>, %arg3: memref<4x1xf32, #tpu.memory_space<vmem>>, %arg4: memref<3x3x4x4xf32, #tpu.memory_space<vmem>>, %arg5: memref<4x1xf32, #tpu.memory_space<vmem>>, %arg6: memref<2x256xi32, #tpu.memory_space<vmem>>, %arg7: memref<1x4x256xf32, #tpu.memory_space<vmem>>) attributes {dimension_semantics = [#tpu.dimension_semantics<parallel>], iteration_bounds = array<i64: 2>, scalar_prefetch = 0 : i64, scratch_operands = 0 : i64, tpu.core_type = #tpu.core_type<tc>, window_params = [{transform_indices = @transform_0, window_bounds = array<i64: 1, 4, 256>}, {pipeline_mode = #tpu.pipeline_mode<synchronous>, transform_indices = @transform_1, window_bounds = array<i64: 3, 3, 4, 4>}, {pipeline_mode = #tpu.pipeline_mode<synchronous>, transform_indices = @transform_2, window_bounds = array<i64: 4, 1>}, {pipeline_mode = #tpu.pipeline_mode<synchronous>, transform_indices = @transform_3, window_bounds = array<i64: 3, 3, 4, 4>}, {pipeline_mode = #tpu.pipeline_mode<synchronous>, transform_indices = @transform_4, window_bounds = array<i64: 4, 1>}, {pipeline_mode = #tpu.pipeline_mode<synchronous>, transform_indices = @transform_5, window_bounds = array<i64: 2, 256>}, {transform_indices = @transform_6, window_bounds = array<i64: 1, 4, 256>}]} {
    %c0 = arith.constant 0 : index
    %c0_0 = arith.constant 0 : index
    %0 = vector.load %arg6[%c0, %c0_0] : memref<2x256xi32, #tpu.memory_space<vmem>>, vector<1x256xi32>
    %c1 = arith.constant 1 : index
    %c0_1 = arith.constant 0 : index
    %1 = vector.load %arg6[%c1, %c0_1] : memref<2x256xi32, #tpu.memory_space<vmem>>, vector<1x256xi32>
    %c0_i32 = arith.constant 0 : i32
    %2 = vector.broadcast %c0_i32 : i32 to vector<1x256xi32>
    %3 = arith.cmpi eq, %0, %2 : vector<1x256xi32>
    %c15_i32 = arith.constant 15 : i32
    %4 = vector.broadcast %c15_i32 : i32 to vector<1x256xi32>
    %5 = arith.cmpi eq, %0, %4 : vector<1x256xi32>
    %c0_i32_2 = arith.constant 0 : i32
    %6 = vector.broadcast %c0_i32_2 : i32 to vector<1x256xi32>
    %7 = arith.cmpi eq, %1, %6 : vector<1x256xi32>
    %c15_i32_3 = arith.constant 15 : i32
    %8 = vector.broadcast %c15_i32_3 : i32 to vector<1x256xi32>
    %9 = arith.cmpi eq, %1, %8 : vector<1x256xi32>
    %c0_4 = arith.constant 0 : index
    %c0_5 = arith.constant 0 : index
    %c0_6 = arith.constant 0 : index
    %10 = vector.load %arg1[%c0_4, %c0_5, %c0_6] : memref<1x4x256xf32, #tpu.memory_space<vmem>>, vector<1x4x256xf32>
    %11 = vector.shape_cast %10 : vector<1x4x256xf32> to vector<4x256xf32>
    %c16_i32 = arith.constant 16 : i32
    %12 = tpu.dynamic_rotate %11 by %c16_i32 dim 1 : vector<4x256xf32>, i32 -> vector<4x256xf32>
    %c240_i32 = arith.constant 240 : i32
    %13 = tpu.dynamic_rotate %11 by %c240_i32 dim 1 : vector<4x256xf32>, i32 -> vector<4x256xf32>
    %14 = vector.shape_cast %7 : vector<1x256xi1> to vector<1x256xi1>
    %15 = vector.broadcast %14 : vector<1x256xi1> to vector<4x256xi1>
    %16 = arith.select %15, %13, %12 : vector<4x256xi1>, vector<4x256xf32>
    %17 = vector.shape_cast %9 : vector<1x256xi1> to vector<1x256xi1>
    %18 = vector.broadcast %17 : vector<1x256xi1> to vector<4x256xi1>
    %19 = arith.select %18, %12, %13 : vector<4x256xi1>, vector<4x256xf32>
    %c0_7 = arith.constant 0 : index
    %c0_8 = arith.constant 0 : index
    %20 = vector.load %arg3[%c0_7, %c0_8] : memref<4x1xf32, #tpu.memory_space<vmem>>, vector<4x1xf32>
    %21 = vector.shape_cast %20 : vector<4x1xf32> to vector<4x1xf32>
    %22 = vector.broadcast %21 : vector<4x1xf32> to vector<4x256xf32>
    %c1_i32 = arith.constant 1 : i32
    %23 = tpu.dynamic_rotate %16 by %c1_i32 dim 1 : vector<4x256xf32>, i32 -> vector<4x256xf32>
    %c255_i32 = arith.constant 255 : i32
    %24 = tpu.dynamic_rotate %16 by %c255_i32 dim 1 : vector<4x256xf32>, i32 -> vector<4x256xf32>
    %25 = vector.shape_cast %3 : vector<1x256xi1> to vector<1x256xi1>
    %26 = vector.broadcast %25 : vector<1x256xi1> to vector<4x256xi1>
    %27 = arith.select %26, %24, %23 : vector<4x256xi1>, vector<4x256xf32>
    %28 = vector.shape_cast %5 : vector<1x256xi1> to vector<1x256xi1>
    %29 = vector.broadcast %28 : vector<1x256xi1> to vector<4x256xi1>
    %30 = arith.select %29, %23, %24 : vector<4x256xi1>, vector<4x256xf32>
    %c0_9 = arith.constant 0 : index
    %c0_10 = arith.constant 0 : index
    %c0_11 = arith.constant 0 : index
    %c0_12 = arith.constant 0 : index
    %31 = vector.load %arg2[%c0_9, %c0_10, %c0_11, %c0_12] : memref<3x3x4x4xf32, #tpu.memory_space<vmem>>, vector<1x1x4x4xf32>
    %32 = vector.shape_cast %31 : vector<1x1x4x4xf32> to vector<4x4xf32>
    %cst = arith.constant dense<0.000000e+00> : vector<4x256xf32>
    %33 = tpu.matmul %32, %27, %cst {dimension_numbers = #tpu.dot_dimension_numbers<[1], [0], [0], [1], [0, 0, 1, 1], [], []>} : vector<4x4xf32>, vector<4x256xf32>, vector<4x256xf32> -> vector<4x256xf32>
    %34 = arith.addf %22, %33 : vector<4x256xf32>
    %c0_13 = arith.constant 0 : index
    %c1_14 = arith.constant 1 : index
    %c0_15 = arith.constant 0 : index
    %c0_16 = arith.constant 0 : index
    %35 = vector.load %arg2[%c0_13, %c1_14, %c0_15, %c0_16] : memref<3x3x4x4xf32, #tpu.memory_space<vmem>>, vector<1x1x4x4xf32>
    %36 = vector.shape_cast %35 : vector<1x1x4x4xf32> to vector<4x4xf32>
    %cst_17 = arith.constant dense<0.000000e+00> : vector<4x256xf32>
    %37 = tpu.matmul %36, %16, %cst_17 {dimension_numbers = #tpu.dot_dimension_numbers<[1], [0], [0], [1], [0, 0, 1, 1], [], []>} : vector<4x4xf32>, vector<4x256xf32>, vector<4x256xf32> -> vector<4x256xf32>
    %38 = arith.addf %34, %37 : vector<4x256xf32>
    %c0_18 = arith.constant 0 : index
    %c2 = arith.constant 2 : index
    %c0_19 = arith.constant 0 : index
    %c0_20 = arith.constant 0 : index
    %39 = vector.load %arg2[%c0_18, %c2, %c0_19, %c0_20] : memref<3x3x4x4xf32, #tpu.memory_space<vmem>>, vector<1x1x4x4xf32>
    %40 = vector.shape_cast %39 : vector<1x1x4x4xf32> to vector<4x4xf32>
    %cst_21 = arith.constant dense<0.000000e+00> : vector<4x256xf32>
    %41 = tpu.matmul %40, %30, %cst_21 {dimension_numbers = #tpu.dot_dimension_numbers<[1], [0], [0], [1], [0, 0, 1, 1], [], []>} : vector<4x4xf32>, vector<4x256xf32>, vector<4x256xf32> -> vector<4x256xf32>
    %42 = arith.addf %38, %41 : vector<4x256xf32>
    %c1_i32_22 = arith.constant 1 : i32
    %43 = tpu.dynamic_rotate %11 by %c1_i32_22 dim 1 : vector<4x256xf32>, i32 -> vector<4x256xf32>
    %c255_i32_23 = arith.constant 255 : i32
    %44 = tpu.dynamic_rotate %11 by %c255_i32_23 dim 1 : vector<4x256xf32>, i32 -> vector<4x256xf32>
    %45 = vector.shape_cast %3 : vector<1x256xi1> to vector<1x256xi1>
    %46 = vector.broadcast %45 : vector<1x256xi1> to vector<4x256xi1>
    %47 = arith.select %46, %44, %43 : vector<4x256xi1>, vector<4x256xf32>
    %48 = vector.shape_cast %5 : vector<1x256xi1> to vector<1x256xi1>
    %49 = vector.broadcast %48 : vector<1x256xi1> to vector<4x256xi1>
    %50 = arith.select %49, %43, %44 : vector<4x256xi1>, vector<4x256xf32>
    %c1_24 = arith.constant 1 : index
    %c0_25 = arith.constant 0 : index
    %c0_26 = arith.constant 0 : index
    %c0_27 = arith.constant 0 : index
    %51 = vector.load %arg2[%c1_24, %c0_25, %c0_26, %c0_27] : memref<3x3x4x4xf32, #tpu.memory_space<vmem>>, vector<1x1x4x4xf32>
    %52 = vector.shape_cast %51 : vector<1x1x4x4xf32> to vector<4x4xf32>
    %cst_28 = arith.constant dense<0.000000e+00> : vector<4x256xf32>
    %53 = tpu.matmul %52, %47, %cst_28 {dimension_numbers = #tpu.dot_dimension_numbers<[1], [0], [0], [1], [0, 0, 1, 1], [], []>} : vector<4x4xf32>, vector<4x256xf32>, vector<4x256xf32> -> vector<4x256xf32>
    %54 = arith.addf %42, %53 : vector<4x256xf32>
    %c1_29 = arith.constant 1 : index
    %c1_30 = arith.constant 1 : index
    %c0_31 = arith.constant 0 : index
    %c0_32 = arith.constant 0 : index
    %55 = vector.load %arg2[%c1_29, %c1_30, %c0_31, %c0_32] : memref<3x3x4x4xf32, #tpu.memory_space<vmem>>, vector<1x1x4x4xf32>
    %56 = vector.shape_cast %55 : vector<1x1x4x4xf32> to vector<4x4xf32>
    %cst_33 = arith.constant dense<0.000000e+00> : vector<4x256xf32>
    %57 = tpu.matmul %56, %11, %cst_33 {dimension_numbers = #tpu.dot_dimension_numbers<[1], [0], [0], [1], [0, 0, 1, 1], [], []>} : vector<4x4xf32>, vector<4x256xf32>, vector<4x256xf32> -> vector<4x256xf32>
    %58 = arith.addf %54, %57 : vector<4x256xf32>
    %c1_34 = arith.constant 1 : index
    %c2_35 = arith.constant 2 : index
    %c0_36 = arith.constant 0 : index
    %c0_37 = arith.constant 0 : index
    %59 = vector.load %arg2[%c1_34, %c2_35, %c0_36, %c0_37] : memref<3x3x4x4xf32, #tpu.memory_space<vmem>>, vector<1x1x4x4xf32>
    %60 = vector.shape_cast %59 : vector<1x1x4x4xf32> to vector<4x4xf32>
    %cst_38 = arith.constant dense<0.000000e+00> : vector<4x256xf32>
    %61 = tpu.matmul %60, %50, %cst_38 {dimension_numbers = #tpu.dot_dimension_numbers<[1], [0], [0], [1], [0, 0, 1, 1], [], []>} : vector<4x4xf32>, vector<4x256xf32>, vector<4x256xf32> -> vector<4x256xf32>
    %62 = arith.addf %58, %61 : vector<4x256xf32>
    %c1_i32_39 = arith.constant 1 : i32
    %63 = tpu.dynamic_rotate %19 by %c1_i32_39 dim 1 : vector<4x256xf32>, i32 -> vector<4x256xf32>
    %c255_i32_40 = arith.constant 255 : i32
    %64 = tpu.dynamic_rotate %19 by %c255_i32_40 dim 1 : vector<4x256xf32>, i32 -> vector<4x256xf32>
    %65 = vector.shape_cast %3 : vector<1x256xi1> to vector<1x256xi1>
    %66 = vector.broadcast %65 : vector<1x256xi1> to vector<4x256xi1>
    %67 = arith.select %66, %64, %63 : vector<4x256xi1>, vector<4x256xf32>
    %68 = vector.shape_cast %5 : vector<1x256xi1> to vector<1x256xi1>
    %69 = vector.broadcast %68 : vector<1x256xi1> to vector<4x256xi1>
    %70 = arith.select %69, %63, %64 : vector<4x256xi1>, vector<4x256xf32>
    %c2_41 = arith.constant 2 : index
    %c0_42 = arith.constant 0 : index
    %c0_43 = arith.constant 0 : index
    %c0_44 = arith.constant 0 : index
    %71 = vector.load %arg2[%c2_41, %c0_42, %c0_43, %c0_44] : memref<3x3x4x4xf32, #tpu.memory_space<vmem>>, vector<1x1x4x4xf32>
    %72 = vector.shape_cast %71 : vector<1x1x4x4xf32> to vector<4x4xf32>
    %cst_45 = arith.constant dense<0.000000e+00> : vector<4x256xf32>
    %73 = tpu.matmul %72, %67, %cst_45 {dimension_numbers = #tpu.dot_dimension_numbers<[1], [0], [0], [1], [0, 0, 1, 1], [], []>} : vector<4x4xf32>, vector<4x256xf32>, vector<4x256xf32> -> vector<4x256xf32>
    %74 = arith.addf %62, %73 : vector<4x256xf32>
    %c2_46 = arith.constant 2 : index
    %c1_47 = arith.constant 1 : index
    %c0_48 = arith.constant 0 : index
    %c0_49 = arith.constant 0 : index
    %75 = vector.load %arg2[%c2_46, %c1_47, %c0_48, %c0_49] : memref<3x3x4x4xf32, #tpu.memory_space<vmem>>, vector<1x1x4x4xf32>
    %76 = vector.shape_cast %75 : vector<1x1x4x4xf32> to vector<4x4xf32>
    %cst_50 = arith.constant dense<0.000000e+00> : vector<4x256xf32>
    %77 = tpu.matmul %76, %19, %cst_50 {dimension_numbers = #tpu.dot_dimension_numbers<[1], [0], [0], [1], [0, 0, 1, 1], [], []>} : vector<4x4xf32>, vector<4x256xf32>, vector<4x256xf32> -> vector<4x256xf32>
    %78 = arith.addf %74, %77 : vector<4x256xf32>
    %c2_51 = arith.constant 2 : index
    %c2_52 = arith.constant 2 : index
    %c0_53 = arith.constant 0 : index
    %c0_54 = arith.constant 0 : index
    %79 = vector.load %arg2[%c2_51, %c2_52, %c0_53, %c0_54] : memref<3x3x4x4xf32, #tpu.memory_space<vmem>>, vector<1x1x4x4xf32>
    %80 = vector.shape_cast %79 : vector<1x1x4x4xf32> to vector<4x4xf32>
    %cst_55 = arith.constant dense<0.000000e+00> : vector<4x256xf32>
    %81 = tpu.matmul %80, %70, %cst_55 {dimension_numbers = #tpu.dot_dimension_numbers<[1], [0], [0], [1], [0, 0, 1, 1], [], []>} : vector<4x4xf32>, vector<4x256xf32>, vector<4x256xf32> -> vector<4x256xf32>
    %82 = arith.addf %78, %81 : vector<4x256xf32>
    %cst_56 = arith.constant dense<0.000000e+00> : vector<4xf32>
    %83 = vector.multi_reduction <add>, %82, %cst_56 [1] : vector<4x256xf32> to vector<4xf32>
    %84 = vector.shape_cast %83 : vector<4xf32> to vector<4x1xf32>
    %85 = arith.mulf %82, %82 : vector<4x256xf32>
    %cst_57 = arith.constant dense<0.000000e+00> : vector<4xf32>
    %86 = vector.multi_reduction <add>, %85, %cst_57 [1] : vector<4x256xf32> to vector<4xf32>
    %87 = vector.shape_cast %86 : vector<4xf32> to vector<4x1xf32>
    %cst_58 = arith.constant 3.906250e-03 : f32
    %88 = vector.broadcast %cst_58 : f32 to vector<4x1xf32>
    %89 = arith.mulf %84, %88 : vector<4x1xf32>
    %cst_59 = arith.constant 3.906250e-03 : f32
    %90 = vector.broadcast %cst_59 : f32 to vector<4x1xf32>
    %91 = arith.mulf %87, %90 : vector<4x1xf32>
    %92 = arith.mulf %89, %89 : vector<4x1xf32>
    %93 = arith.subf %91, %92 : vector<4x1xf32>
    %cst_60 = arith.constant 0.000000e+00 : f32
    %94 = vector.broadcast %cst_60 : f32 to vector<4x1xf32>
    %95 = arith.maximumf %93, %94 : vector<4x1xf32>
    %96 = vector.broadcast %89 : vector<4x1xf32> to vector<4x256xf32>
    %97 = arith.subf %82, %96 : vector<4x256xf32>
    %cst_61 = arith.constant 9.99999974E-6 : f32
    %98 = vector.broadcast %cst_61 : f32 to vector<4x1xf32>
    %99 = arith.addf %95, %98 : vector<4x1xf32>
    %100 = math.rsqrt %99 : vector<4x1xf32>
    %101 = vector.broadcast %100 : vector<4x1xf32> to vector<4x256xf32>
    %102 = arith.mulf %97, %101 : vector<4x256xf32>
    %cst_62 = arith.constant 0.000000e+00 : f32
    %103 = vector.broadcast %cst_62 : f32 to vector<4x256xf32>
    %104 = arith.maximumf %102, %103 : vector<4x256xf32>
    %c16_i32_63 = arith.constant 16 : i32
    %105 = tpu.dynamic_rotate %104 by %c16_i32_63 dim 1 : vector<4x256xf32>, i32 -> vector<4x256xf32>
    %c240_i32_64 = arith.constant 240 : i32
    %106 = tpu.dynamic_rotate %104 by %c240_i32_64 dim 1 : vector<4x256xf32>, i32 -> vector<4x256xf32>
    %107 = vector.shape_cast %7 : vector<1x256xi1> to vector<1x256xi1>
    %108 = vector.broadcast %107 : vector<1x256xi1> to vector<4x256xi1>
    %109 = arith.select %108, %106, %105 : vector<4x256xi1>, vector<4x256xf32>
    %110 = vector.shape_cast %9 : vector<1x256xi1> to vector<1x256xi1>
    %111 = vector.broadcast %110 : vector<1x256xi1> to vector<4x256xi1>
    %112 = arith.select %111, %105, %106 : vector<4x256xi1>, vector<4x256xf32>
    %c0_65 = arith.constant 0 : index
    %c0_66 = arith.constant 0 : index
    %113 = vector.load %arg5[%c0_65, %c0_66] : memref<4x1xf32, #tpu.memory_space<vmem>>, vector<4x1xf32>
    %114 = vector.shape_cast %113 : vector<4x1xf32> to vector<4x1xf32>
    %115 = vector.broadcast %114 : vector<4x1xf32> to vector<4x256xf32>
    %c1_i32_67 = arith.constant 1 : i32
    %116 = tpu.dynamic_rotate %109 by %c1_i32_67 dim 1 : vector<4x256xf32>, i32 -> vector<4x256xf32>
    %c255_i32_68 = arith.constant 255 : i32
    %117 = tpu.dynamic_rotate %109 by %c255_i32_68 dim 1 : vector<4x256xf32>, i32 -> vector<4x256xf32>
    %118 = vector.shape_cast %3 : vector<1x256xi1> to vector<1x256xi1>
    %119 = vector.broadcast %118 : vector<1x256xi1> to vector<4x256xi1>
    %120 = arith.select %119, %117, %116 : vector<4x256xi1>, vector<4x256xf32>
    %121 = vector.shape_cast %5 : vector<1x256xi1> to vector<1x256xi1>
    %122 = vector.broadcast %121 : vector<1x256xi1> to vector<4x256xi1>
    %123 = arith.select %122, %116, %117 : vector<4x256xi1>, vector<4x256xf32>
    %c0_69 = arith.constant 0 : index
    %c0_70 = arith.constant 0 : index
    %c0_71 = arith.constant 0 : index
    %c0_72 = arith.constant 0 : index
    %124 = vector.load %arg4[%c0_69, %c0_70, %c0_71, %c0_72] : memref<3x3x4x4xf32, #tpu.memory_space<vmem>>, vector<1x1x4x4xf32>
    %125 = vector.shape_cast %124 : vector<1x1x4x4xf32> to vector<4x4xf32>
    %cst_73 = arith.constant dense<0.000000e+00> : vector<4x256xf32>
    %126 = tpu.matmul %125, %120, %cst_73 {dimension_numbers = #tpu.dot_dimension_numbers<[1], [0], [0], [1], [0, 0, 1, 1], [], []>} : vector<4x4xf32>, vector<4x256xf32>, vector<4x256xf32> -> vector<4x256xf32>
    %127 = arith.addf %115, %126 : vector<4x256xf32>
    %c0_74 = arith.constant 0 : index
    %c1_75 = arith.constant 1 : index
    %c0_76 = arith.constant 0 : index
    %c0_77 = arith.constant 0 : index
    %128 = vector.load %arg4[%c0_74, %c1_75, %c0_76, %c0_77] : memref<3x3x4x4xf32, #tpu.memory_space<vmem>>, vector<1x1x4x4xf32>
    %129 = vector.shape_cast %128 : vector<1x1x4x4xf32> to vector<4x4xf32>
    %cst_78 = arith.constant dense<0.000000e+00> : vector<4x256xf32>
    %130 = tpu.matmul %129, %109, %cst_78 {dimension_numbers = #tpu.dot_dimension_numbers<[1], [0], [0], [1], [0, 0, 1, 1], [], []>} : vector<4x4xf32>, vector<4x256xf32>, vector<4x256xf32> -> vector<4x256xf32>
    %131 = arith.addf %127, %130 : vector<4x256xf32>
    %c0_79 = arith.constant 0 : index
    %c2_80 = arith.constant 2 : index
    %c0_81 = arith.constant 0 : index
    %c0_82 = arith.constant 0 : index
    %132 = vector.load %arg4[%c0_79, %c2_80, %c0_81, %c0_82] : memref<3x3x4x4xf32, #tpu.memory_space<vmem>>, vector<1x1x4x4xf32>
    %133 = vector.shape_cast %132 : vector<1x1x4x4xf32> to vector<4x4xf32>
    %cst_83 = arith.constant dense<0.000000e+00> : vector<4x256xf32>
    %134 = tpu.matmul %133, %123, %cst_83 {dimension_numbers = #tpu.dot_dimension_numbers<[1], [0], [0], [1], [0, 0, 1, 1], [], []>} : vector<4x4xf32>, vector<4x256xf32>, vector<4x256xf32> -> vector<4x256xf32>
    %135 = arith.addf %131, %134 : vector<4x256xf32>
    %c1_i32_84 = arith.constant 1 : i32
    %136 = tpu.dynamic_rotate %104 by %c1_i32_84 dim 1 : vector<4x256xf32>, i32 -> vector<4x256xf32>
    %c255_i32_85 = arith.constant 255 : i32
    %137 = tpu.dynamic_rotate %104 by %c255_i32_85 dim 1 : vector<4x256xf32>, i32 -> vector<4x256xf32>
    %138 = vector.shape_cast %3 : vector<1x256xi1> to vector<1x256xi1>
    %139 = vector.broadcast %138 : vector<1x256xi1> to vector<4x256xi1>
    %140 = arith.select %139, %137, %136 : vector<4x256xi1>, vector<4x256xf32>
    %141 = vector.shape_cast %5 : vector<1x256xi1> to vector<1x256xi1>
    %142 = vector.broadcast %141 : vector<1x256xi1> to vector<4x256xi1>
    %143 = arith.select %142, %136, %137 : vector<4x256xi1>, vector<4x256xf32>
    %c1_86 = arith.constant 1 : index
    %c0_87 = arith.constant 0 : index
    %c0_88 = arith.constant 0 : index
    %c0_89 = arith.constant 0 : index
    %144 = vector.load %arg4[%c1_86, %c0_87, %c0_88, %c0_89] : memref<3x3x4x4xf32, #tpu.memory_space<vmem>>, vector<1x1x4x4xf32>
    %145 = vector.shape_cast %144 : vector<1x1x4x4xf32> to vector<4x4xf32>
    %cst_90 = arith.constant dense<0.000000e+00> : vector<4x256xf32>
    %146 = tpu.matmul %145, %140, %cst_90 {dimension_numbers = #tpu.dot_dimension_numbers<[1], [0], [0], [1], [0, 0, 1, 1], [], []>} : vector<4x4xf32>, vector<4x256xf32>, vector<4x256xf32> -> vector<4x256xf32>
    %147 = arith.addf %135, %146 : vector<4x256xf32>
    %c1_91 = arith.constant 1 : index
    %c1_92 = arith.constant 1 : index
    %c0_93 = arith.constant 0 : index
    %c0_94 = arith.constant 0 : index
    %148 = vector.load %arg4[%c1_91, %c1_92, %c0_93, %c0_94] : memref<3x3x4x4xf32, #tpu.memory_space<vmem>>, vector<1x1x4x4xf32>
    %149 = vector.shape_cast %148 : vector<1x1x4x4xf32> to vector<4x4xf32>
    %cst_95 = arith.constant dense<0.000000e+00> : vector<4x256xf32>
    %150 = tpu.matmul %149, %104, %cst_95 {dimension_numbers = #tpu.dot_dimension_numbers<[1], [0], [0], [1], [0, 0, 1, 1], [], []>} : vector<4x4xf32>, vector<4x256xf32>, vector<4x256xf32> -> vector<4x256xf32>
    %151 = arith.addf %147, %150 : vector<4x256xf32>
    %c1_96 = arith.constant 1 : index
    %c2_97 = arith.constant 2 : index
    %c0_98 = arith.constant 0 : index
    %c0_99 = arith.constant 0 : index
    %152 = vector.load %arg4[%c1_96, %c2_97, %c0_98, %c0_99] : memref<3x3x4x4xf32, #tpu.memory_space<vmem>>, vector<1x1x4x4xf32>
    %153 = vector.shape_cast %152 : vector<1x1x4x4xf32> to vector<4x4xf32>
    %cst_100 = arith.constant dense<0.000000e+00> : vector<4x256xf32>
    %154 = tpu.matmul %153, %143, %cst_100 {dimension_numbers = #tpu.dot_dimension_numbers<[1], [0], [0], [1], [0, 0, 1, 1], [], []>} : vector<4x4xf32>, vector<4x256xf32>, vector<4x256xf32> -> vector<4x256xf32>
    %155 = arith.addf %151, %154 : vector<4x256xf32>
    %c1_i32_101 = arith.constant 1 : i32
    %156 = tpu.dynamic_rotate %112 by %c1_i32_101 dim 1 : vector<4x256xf32>, i32 -> vector<4x256xf32>
    %c255_i32_102 = arith.constant 255 : i32
    %157 = tpu.dynamic_rotate %112 by %c255_i32_102 dim 1 : vector<4x256xf32>, i32 -> vector<4x256xf32>
    %158 = vector.shape_cast %3 : vector<1x256xi1> to vector<1x256xi1>
    %159 = vector.broadcast %158 : vector<1x256xi1> to vector<4x256xi1>
    %160 = arith.select %159, %157, %156 : vector<4x256xi1>, vector<4x256xf32>
    %161 = vector.shape_cast %5 : vector<1x256xi1> to vector<1x256xi1>
    %162 = vector.broadcast %161 : vector<1x256xi1> to vector<4x256xi1>
    %163 = arith.select %162, %156, %157 : vector<4x256xi1>, vector<4x256xf32>
    %c2_103 = arith.constant 2 : index
    %c0_104 = arith.constant 0 : index
    %c0_105 = arith.constant 0 : index
    %c0_106 = arith.constant 0 : index
    %164 = vector.load %arg4[%c2_103, %c0_104, %c0_105, %c0_106] : memref<3x3x4x4xf32, #tpu.memory_space<vmem>>, vector<1x1x4x4xf32>
    %165 = vector.shape_cast %164 : vector<1x1x4x4xf32> to vector<4x4xf32>
    %cst_107 = arith.constant dense<0.000000e+00> : vector<4x256xf32>
    %166 = tpu.matmul %165, %160, %cst_107 {dimension_numbers = #tpu.dot_dimension_numbers<[1], [0], [0], [1], [0, 0, 1, 1], [], []>} : vector<4x4xf32>, vector<4x256xf32>, vector<4x256xf32> -> vector<4x256xf32>
    %167 = arith.addf %155, %166 : vector<4x256xf32>
    %c2_108 = arith.constant 2 : index
    %c1_109 = arith.constant 1 : index
    %c0_110 = arith.constant 0 : index
    %c0_111 = arith.constant 0 : index
    %168 = vector.load %arg4[%c2_108, %c1_109, %c0_110, %c0_111] : memref<3x3x4x4xf32, #tpu.memory_space<vmem>>, vector<1x1x4x4xf32>
    %169 = vector.shape_cast %168 : vector<1x1x4x4xf32> to vector<4x4xf32>
    %cst_112 = arith.constant dense<0.000000e+00> : vector<4x256xf32>
    %170 = tpu.matmul %169, %112, %cst_112 {dimension_numbers = #tpu.dot_dimension_numbers<[1], [0], [0], [1], [0, 0, 1, 1], [], []>} : vector<4x4xf32>, vector<4x256xf32>, vector<4x256xf32> -> vector<4x256xf32>
    %171 = arith.addf %167, %170 : vector<4x256xf32>
    %c2_113 = arith.constant 2 : index
    %c2_114 = arith.constant 2 : index
    %c0_115 = arith.constant 0 : index
    %c0_116 = arith.constant 0 : index
    %172 = vector.load %arg4[%c2_113, %c2_114, %c0_115, %c0_116] : memref<3x3x4x4xf32, #tpu.memory_space<vmem>>, vector<1x1x4x4xf32>
    %173 = vector.shape_cast %172 : vector<1x1x4x4xf32> to vector<4x4xf32>
    %cst_117 = arith.constant dense<0.000000e+00> : vector<4x256xf32>
    %174 = tpu.matmul %173, %163, %cst_117 {dimension_numbers = #tpu.dot_dimension_numbers<[1], [0], [0], [1], [0, 0, 1, 1], [], []>} : vector<4x4xf32>, vector<4x256xf32>, vector<4x256xf32> -> vector<4x256xf32>
    %175 = arith.addf %171, %174 : vector<4x256xf32>
    %cst_118 = arith.constant dense<0.000000e+00> : vector<4xf32>
    %176 = vector.multi_reduction <add>, %175, %cst_118 [1] : vector<4x256xf32> to vector<4xf32>
    %177 = vector.shape_cast %176 : vector<4xf32> to vector<4x1xf32>
    %178 = arith.mulf %175, %175 : vector<4x256xf32>
    %cst_119 = arith.constant dense<0.000000e+00> : vector<4xf32>
    %179 = vector.multi_reduction <add>, %178, %cst_119 [1] : vector<4x256xf32> to vector<4xf32>
    %180 = vector.shape_cast %179 : vector<4xf32> to vector<4x1xf32>
    %cst_120 = arith.constant 3.906250e-03 : f32
    %181 = vector.broadcast %cst_120 : f32 to vector<4x1xf32>
    %182 = arith.mulf %177, %181 : vector<4x1xf32>
    %cst_121 = arith.constant 3.906250e-03 : f32
    %183 = vector.broadcast %cst_121 : f32 to vector<4x1xf32>
    %184 = arith.mulf %180, %183 : vector<4x1xf32>
    %185 = arith.mulf %182, %182 : vector<4x1xf32>
    %186 = arith.subf %184, %185 : vector<4x1xf32>
    %cst_122 = arith.constant 0.000000e+00 : f32
    %187 = vector.broadcast %cst_122 : f32 to vector<4x1xf32>
    %188 = arith.maximumf %186, %187 : vector<4x1xf32>
    %189 = vector.broadcast %182 : vector<4x1xf32> to vector<4x256xf32>
    %190 = arith.subf %175, %189 : vector<4x256xf32>
    %cst_123 = arith.constant 9.99999974E-6 : f32
    %191 = vector.broadcast %cst_123 : f32 to vector<4x1xf32>
    %192 = arith.addf %188, %191 : vector<4x1xf32>
    %193 = math.rsqrt %192 : vector<4x1xf32>
    %194 = vector.broadcast %193 : vector<4x1xf32> to vector<4x256xf32>
    %195 = arith.mulf %190, %194 : vector<4x256xf32>
    %c0_124 = arith.constant 0 : index
    %c0_125 = arith.constant 0 : index
    %c0_126 = arith.constant 0 : index
    %196 = vector.load %arg1[%c0_124, %c0_125, %c0_126] : memref<1x4x256xf32, #tpu.memory_space<vmem>>, vector<1x4x256xf32>
    %197 = vector.shape_cast %196 : vector<1x4x256xf32> to vector<4x256xf32>
    %198 = arith.addf %197, %195 : vector<4x256xf32>
    %c0_127 = arith.constant 0 : index
    %c0_128 = arith.constant 0 : index
    %c0_129 = arith.constant 0 : index
    %199 = vector.load %arg7[%c0_127, %c0_128, %c0_129] : memref<1x4x256xf32, #tpu.memory_space<vmem>>, vector<1x4x256xf32>
    %200 = vector.shape_cast %199 : vector<1x4x256xf32> to vector<4x256xf32>
    %201 = vector.shape_cast %198 : vector<4x256xf32> to vector<1x4x256xf32>
    tpu.vector_store %arg7[%c0_127, %c0_128, %c0_129], %201 {strides = array<i32>} : memref<1x4x256xf32, #tpu.memory_space<vmem>>, vector<1x4x256xf32>,
    return
  }
  func.func @transform_0(%arg0: i32) -> (i32, i32, i32) {
    %c0_i32 = arith.constant 0 : i32
    %c0_i32_0 = arith.constant 0 : i32
    %c0_i32_1 = arith.constant 0 : i32
    return %arg0, %c0_i32, %c0_i32_0 : i32, i32, i32
  }
  func.func @transform_1(%arg0: i32) -> (i32, i32, i32, i32) {
    %c0_i32 = arith.constant 0 : i32
    %c0_i32_0 = arith.constant 0 : i32
    %c0_i32_1 = arith.constant 0 : i32
    %c0_i32_2 = arith.constant 0 : i32
    %c0_i32_3 = arith.constant 0 : i32
    return %c0_i32, %c0_i32_0, %c0_i32_1, %c0_i32_2 : i32, i32, i32, i32
  }
  func.func @transform_2(%arg0: i32) -> (i32, i32) {
    %c0_i32 = arith.constant 0 : i32
    %c0_i32_0 = arith.constant 0 : i32
    %c0_i32_1 = arith.constant 0 : i32
    return %c0_i32, %c0_i32_0 : i32, i32
  }
  func.func @transform_3(%arg0: i32) -> (i32, i32, i32, i32) {
    %c0_i32 = arith.constant 0 : i32
    %c0_i32_0 = arith.constant 0 : i32
    %c0_i32_1 = arith.constant 0 : i32
    %c0_i32_2 = arith.constant 0 : i32
    %c0_i32_3 = arith.constant 0 : i32
    return %c0_i32, %c0_i32_0, %c0_i32_1, %c0_i32_2 : i32, i32, i32, i32
  }
  func.func @transform_4(%arg0: i32) -> (i32, i32) {
    %c0_i32 = arith.constant 0 : i32
    %c0_i32_0 = arith.constant 0 : i32
    %c0_i32_1 = arith.constant 0 : i32
    return %c0_i32, %c0_i32_0 : i32, i32
  }
  func.func @transform_5(%arg0: i32) -> (i32, i32) {
    %c0_i32 = arith.constant 0 : i32
    %c0_i32_0 = arith.constant 0 : i32
    %c0_i32_1 = arith.constant 0 : i32
    return %c0_i32, %c0_i32_0 : i32, i32
  }
  func.func @transform_6(%arg0: i32) -> (i32, i32, i32) {
    %c0_i32 = arith.constant 0 : i32
    %c0_i32_0 = arith.constant 0 : i32
    %c0_i32_1 = arith.constant 0 : i32
    return %arg0, %c0_i32, %c0_i32_0 : i32, i32, i32
  }
}

</mosaic_0001>

<bundles_post_ra>
// kernel: residual_block.1
= control target key start
LH: loop header
LB: loop body
LE: loop exit
PB: predicated region body
PF: predicated region fallthrough
CT: control target
= control target key end

     0   :  { %s2261_s21 = smov 0   ;;  %s2697_s0 = inlined_call_operand.vmem [shape: f32[2,4,256], index: 0, kind: input, shape index: {}]   ;;  %s2698_s1 = inlined_call_operand.vmem [shape: f32[3,3,4,4], index: 1, kind: input, shape index: {}]   ;;  %s2699_s2 = inlined_call_operand.vmem [shape: f32[4,1], index: 2, kind: input, shape index: {}]   ;;  %s2700_s3 = inlined_call_operand.vmem [shape: f32[3,3,4,4], index: 3, kind: input, shape index: {}]   ;;  %s2701_s4 = inlined_call_operand.vmem [shape: f32[4,1], index: 4, kind: input, shape index: {}]   ;;  %s2702_s5 = inlined_call_operand.vmem [shape: s32[2,256], index: 5, kind: input, shape index: {}]   ;;  %s2703_s6 = inlined_call_operand.vmem [shape: f32[2,4,256], index: 6, kind: output, shape index: {}]  }
   0x1 LB: > { %s2072_s22 = sadd.s32 4294967295, %s2218_s21   ;;  %p2076_p0 = scmp.ge.s32.totalorder %s2218_s21, 1  ;;  %s2218_s21 = sphi %s2261_s21, %s16_s21  }
   0x2   : > { %p212_p1 = scmp.lt.s32.totalorder %s2218_s21, 3 }
   0x4   : > { %p213_p2 = pnand %p2076_p0, %p212_p1 }
   0x5   : > { %p242_p3 = scmp.lt.s32.totalorder (!%p213_p2), %s2072_s22, 1  ;;  %v2220_v0 = vmov (!%p213_p2), 0   ;;  %s2221_s27 = smov (!%p213_p2), 112   ;;  %v267_v3 = vlaneseq (!%p213_p2)  ;;  %v2081_v4 = vld [vmem:[%s2702_s5 + $0x1] ss:$2 sm:$0x3] (!%p213_p2) }
   0x6   : > { %216 = sbr.rel (%p213_p2) target bundleno = 1410 (0x582), region = 44  ;;  %2206 = vset.pattern.permute.xlu0 (!%p213_p2), %v2220_v0  ;;  %s2222_s28 = smov (!%p213_p2), 16   ;;  %vm257_vm0 = vcmp.eq.s32.totalorder (!%p213_p2), %v2081_v4, 0  ;;  %v2223_v14 = vmov (!%p213_p2), 0.0   ;;  %vm258_vm5 = vcmp.eq.s32.totalorder (!%p213_p2), %v2081_v4, 15  ;;  %vm356_vm14 = vcmask (!%p213_p2), 1043456  }
   0x7   : > { %v281_v5 = vshrl.u32 (!%p213_p2), %v267_v3, 7  ;;  %v279_v8 = vsel (!%p213_p2), %vm257_vm0, 1, %v2220_v0  ;;  %v2300_v9 = vand.u32 (!%p213_p2), 127, %v267_v3  ;;  %427 = vmatprep.mubr.f32.mxu0 (!%p213_p2), %v2223_v14  ;;  %1275 = vmatprep.mubr.f32.mxu1 (!%p213_p2), %v2223_v14  ;;  %s2224_s7 = smov (!%p213_p2), 1   ;;  %s2225_s8 = smov (!%p213_p2), 127   ;;  %v292_v25 = vsel (!%p213_p2), %vm258_vm5, 1, %v2220_v0 }
   0x8   : > { %v305_v32 = vld [vmem:[%s2699_s2] sm:$0xf] (!%p213_p2)  ;;  %vm352_vm15 = vcmask (!%p213_p2), 31744   ;;  %v2085_v62 = vld [vmem:[%s2698_s1 + $0x4] sm:$0xf] (!%p213_p2) }
   0x9   : > { %v2295_v6 = vsub.s32 (!%p213_p2), 0, %v281_v5  ;;  %v2297_v7 = vsub.s32 (!%p213_p2), 1, %v281_v5  ;;  %vm276_vm1 = vcmp.lt.s32.totalorder (!%p213_p2), %v2300_v9, 112  ;;  %vm269_vm2 = vcmp.lt.s32.totalorder (!%p213_p2), %v2300_v9, 16  ;;  %v351_v51 = vld [vmem:[%s2698_s1] sm:$0xf] (!%p213_p2) }
   0xa   : > { %v252_v33 = vld [vmem:[%s2702_s5] ss:$2 sm:$0x3] (!%p213_p2)  ;;  %vm315_vm10 = vcmp.lt.s32.totalorder (!%p213_p2), %v2300_v9, 1  ;;  %vm322_vm11 = vcmp.lt.s32.totalorder (!%p213_p2), %v2300_v9, 127 }
   0xb   : > { %v283_v10 = vrot.slane (!%p213_p2), %v279_v8, %v2295_v6  ;;  %v287_v11 = vrot.slane (!%p213_p2), %v279_v8, %v2297_v7  ;;  %v296_v26 = vrot.slane (!%p213_p2), %v292_v25, %v2295_v6  ;;  %v300_v27 = vrot.slane (!%p213_p2), %v292_v25, %v2297_v7  ;;  %v2089_v5 = vld [vmem:[%s2698_s1 + $0x8] sm:$0xf] (!%p213_p2)  ;;  %v2105_v25 = vld [vmem:[%s2698_s1 + $0x18] sm:$0xf] (!%p213_p2)  ;;  %v1179_v29 = vld [vmem:[%s2701_s4] sm:$0xf] (!%p213_p2) }
   0xc   : > { %vm255_vm8 = vcmp.eq.s32.totalorder (!%p213_p2), %v252_v33, 0  ;;  %vm256_vm9 = vcmp.eq.s32.totalorder (!%p213_p2), %v252_v33, 15  ;;  %v2140_v40 = vld [vmem:[%s2700_s3 + $0x18] sm:$0xf] (!%p213_p2)  ;;  %v2144_v41 = vld [vmem:[%s2700_s3 + $0x1c] sm:$0xf] (!%p213_p2) }
   0xd   : > { %s2721_s22 = smov (!%p242_p3, %s2072_s22), 1  ;;  %vm2308_vm3 = vcmp.eq.s32.totalorder %v283_v10, 1  ;;  %vm2312_vm4 = vcmp.eq.s32.totalorder %v287_v11, 1  ;;  %vm2343_vm6 = vcmp.eq.s32.totalorder %v296_v26, 1  ;;  %vm2347_vm7 = vcmp.eq.s32.totalorder %v300_v27, 1 }
   0xe   : > { %s2154_s23 = sshll.u32 %s2721_s22, 3  ;;  %v325_v34 = vsel %vm255_vm8, 1, %v2220_v0  ;;  %v338_v39 = vsel %vm256_vm9, 1, %v2220_v0  ;;  %v2093_v10 = vld [vmem:[%s2698_s1 + $0xc] sm:$0xf] }
   0xf   : > { %s246_s26 = scalar_lea.vmem %s2697_s0, %s2154_s23  ;;  %v333_v35 = vrot.slane %v325_v34, %v2297_v7  ;;  %v329_v36 = vrot.slane %v325_v34, %v2295_v6  ;;  %v346_v42 = vrot.slane %v338_v39, %v2297_v7  ;;  %v342_v55 = vrot.slane %v338_v39, %v2295_v6  ;;  %v2109_v27 = vld [vmem:[%s2698_s1 + $0x1c] sm:$0xf]  ;;  %v2148_v52 = vld [vmem:[%s2700_s3 + $0x20] sm:$0xf] }
  0x10   : > { %v2278_v1 = vld [vmem:[%s246_s26] sm:$0xff] }
  0x11   : > { %272 = vrot.lane.b32.xlu1 %v2278_v1, %s2221_s27  ;;  %263 = vrot.lane.b32.xlu0 %v2278_v1, %s2222_s28  ;;  %v2286_v2 = vcombine.high %v2278_v1, %v2278_v1  ;;  %vm2379_vm12 = vcmp.eq.s32.totalorder %v333_v35, 1  ;;  %vm2383_vm13 = vcmp.eq.s32.totalorder %v329_v36, 1  ;;  %vm2404_vm0 = vcmp.eq.s32.totalorder %v346_v42, 1 }
  0x12   : > { %vm2421_vm5 = vcmp.eq.s32.totalorder %v342_v55, 1 }
  0x15   : > { %274 = vrot.lane.b32.xlu1 %v2286_v2, %s2221_s27  ;;  %265 = vrot.lane.b32.xlu0 %v2286_v2, %s2222_s28 }
  0x83   : > { %v273_v12 = vpop.permute.xlu1 %272  ;;  %v264_v13 = vpop.permute.xlu0 %263 }
  0x87   : > { %v275_v17 = vpop.permute.xlu1 %274  ;;  %v266_v18 = vpop.permute.xlu0 %265 }
  0x88   : > { %v277_v19 = vsel %vm276_vm1, %v273_v12, %v275_v17  ;;  %v278_v20 = vsel %vm276_vm1, %v275_v17, %v273_v12  ;;  %v270_v21 = vsel %vm269_vm2, %v264_v13, %v266_v18  ;;  %v271_v22 = vsel %vm269_vm2, %v266_v18, %v264_v13  ;;  %v2097_v13 = vld [vmem:[%s2698_s1 + $0x10] sm:$0xf] }
  0x89   : > { %v290_v23 = vsel %vm2308_vm3, %v277_v19, %v271_v22  ;;  %v291_v24 = vsel %vm2312_vm4, %v278_v20, %v270_v21  ;;  %v2353_v30 = vsel %vm2343_vm6, %v271_v22, %v277_v19  ;;  %v2357_v31 = vsel %vm2347_vm7, %v270_v21, %v278_v20  ;;  %v2101_v22 = vld [vmem:[%s2698_s1 + $0x14] sm:$0xf] }
  0x8a   : > { %311 = vrot.lane.b32.xlu0 %v290_v23, %s2224_s7  ;;  %313 = vrot.lane.b32.xlu1 %v291_v24, %s2224_s7 }
  0x8e   : > { %318 = vrot.lane.b32.xlu0 %v290_v23, %s2225_s8  ;;  %320 = vrot.lane.b32.xlu1 %v291_v24, %s2225_s8 }
  0x92   : > { %604 = vrot.lane.b32.xlu0 %v2278_v1, %s2224_s7  ;;  %606 = vrot.lane.b32.xlu1 %v2286_v2, %s2224_s7 }
  0x96   : > { %610 = vrot.lane.b32.xlu0 %v2278_v1, %s2225_s8  ;;  %612 = vrot.lane.b32.xlu1 %v2286_v2, %s2225_s8 }
  0x9a   : > { %870 = vrot.lane.b32.xlu0 %v2353_v30, %s2224_s7  ;;  %872 = vrot.lane.b32.xlu1 %v2357_v31, %s2224_s7 }
  0x9e   : > { %876 = vrot.lane.b32.xlu0 %v2353_v30, %s2225_s8  ;;  %878 = vrot.lane.b32.xlu1 %v2357_v31, %s2225_s8 }
  0xa2   : > { %308 = vperm.xlu0 %2206, %v305_v32  }
  0xfc   : > { %v312_v37 = vpop.permute.xlu0 %311  ;;  %v314_v38 = vpop.permute.xlu1 %313 }
  0xfd   : > { %v316_v45 = vsel %vm315_vm10, %v312_v37, %v314_v38  ;;  %v317_v46 = vsel %vm315_vm10, %v314_v38, %v312_v37 }
 0x100   : > { %v319_v43 = vpop.permute.xlu0 %318  ;;  %v321_v44 = vpop.permute.xlu1 %320 }
 0x101   : > { %v323_v47 = vsel %vm322_vm11, %v319_v43, %v321_v44  ;;  %v324_v48 = vsel %vm322_vm11, %v321_v44, %v319_v43 }
 0x102   : > { %v337_v49 = vsel %vm2379_vm12, %v324_v48, %v316_v45  ;;  %v336_v50 = vsel %vm2383_vm13, %v323_v47, %v317_v46  ;;  %v350_v56 = vsel %vm2404_vm0, %v316_v45, %v324_v48  ;;  %v349_v0 = vsel %vm2421_vm5, %v317_v46, %v323_v47 }
 0x103   : > { %2082 = vmatprep.subr.msk.mxu0 %vm356_vm14, %v337_v49 }
 0x104   : > { %v605_v53 = vpop.permute.xlu0 %604  ;;  %2083 = vmatpush1.msk.msra.mxu0 %vm356_vm14, %v336_v50  ;;  %v607_v54 = vpop.permute.xlu1 %606 }
 0x105   : > { %2084 = vmatmul.mubr.msk.f32.vlgmr.msra.gmra.mrb[0].mxu0 %vm352_vm15, %v351_v51  ;;  %2086 = vmatprep.subr.msk.mxu0 %vm356_vm14, %v291_v24  ;;  %v608_v59 = vsel %vm315_vm10, %v605_v53, %v607_v54  ;;  %v609_v3 = vsel %vm315_vm10, %v607_v54, %v605_v53 }
 0x106   : > { %2087 = vmatpush1.msk.msra.mxu0 %vm356_vm14, %v290_v23  ;;  %511 = vmatprep.mubr.f32.mxu0 %v2223_v14 }
 0x107   : > { %2090 = vmatprep.subr.msk.mxu0 %vm356_vm14, %v350_v56 }
 0x108   : > { %v611_v57 = vpop.permute.xlu0 %610  ;;  %v613_v58 = vpop.permute.xlu1 %612 }
 0x109   : > { %v615_v60 = vsel %vm322_vm11, %v613_v58, %v611_v57  ;;  %v614_v4 = vsel %vm322_vm11, %v611_v57, %v613_v58 }
 0x10a   : > { %v617_v63 = vsel %vm2379_vm12, %v615_v60, %v608_v59  ;;  %v616_v6 = vsel %vm2383_vm13, %v614_v4, %v609_v3  ;;  %v619_v11 = vsel %vm2404_vm0, %v608_v59, %v615_v60  ;;  %v618_v18 = vsel %vm2421_vm5, %v609_v3, %v614_v4 }
 0x10c   : > { %v871_v7 = vpop.permute.xlu0 %870  ;;  %v873_v8 = vpop.permute.xlu1 %872 }
 0x10d   : > { %2088 = vmatmul.mubr.msk.f32.vlgmr.msra.gmra.mrb[0].mxu0 %vm352_vm15, %v2085_v62  ;;  %v874_v19 = vsel %vm315_vm10, %v871_v7, %v873_v8  ;;  %v875_v23 = vsel %vm315_vm10, %v873_v8, %v871_v7 }
 0x10e   : > { %2091 = vmatpush1.msk.msra.mxu0 %vm356_vm14, %v349_v0  ;;  %595 = vmatprep.mubr.f32.mxu0 %v2223_v14 }
 0x10f   : > { %2094 = vmatprep.subr.msk.mxu0 %vm356_vm14, %v617_v63 }
 0x110   : > { %v877_v12 = vpop.permute.xlu0 %876 }
 0x115   : > { %2092 = vmatmul.mubr.msk.f32.vlgmr.msra.gmra.mrb[0].mxu0 %vm352_vm15, %v2089_v5 }
 0x116   : > { %2095 = vmatpush1.msk.msra.mxu0 %vm356_vm14, %v616_v6  ;;  %695 = vmatprep.mubr.f32.mxu0 %v2223_v14 }
 0x117   : > { %2098 = vmatprep.subr.msk.mxu0 %vm356_vm14, %v2286_v2  ;;  %v879_v2 = vpop.permute.xlu1 %878 }
 0x118   : > { %v881_v17 = vsel %vm322_vm11, %v879_v2, %v877_v12  ;;  %v880_v21 = vsel %vm322_vm11, %v877_v12, %v879_v2 }
 0x119   : > { %v883_v20 = vsel %vm2379_vm12, %v881_v17, %v874_v19  ;;  %v882_v24 = vsel %vm2383_vm13, %v880_v21, %v875_v23  ;;  %v885_v26 = vsel %vm2404_vm0, %v874_v19, %v881_v17 }
 0x11d   : > { %2096 = vmatmul.mubr.msk.f32.vlgmr.msra.gmra.mrb[0].mxu0 %vm352_vm15, %v2093_v10 }
 0x11e   : > { %2099 = vmatpush1.msk.msra.mxu0 %vm356_vm14, %v2278_v1  ;;  %777 = vmatprep.mubr.f32.mxu0 %v2223_v14 }
 0x11f   : > { %2102 = vmatprep.subr.msk.mxu0 %vm356_vm14, %v619_v11 }
 0x121   : > { %v309_v32 = vpop.permute.xlu0 %308 }
 0x125   : > { %2100 = vmatmul.mubr.msk.f32.vlgmr.msra.gmra.mrb[0].mxu0 %vm352_vm15, %v2097_v13 }
 0x126   : > { %2103 = vmatpush1.msk.msra.mxu0 %vm356_vm14, %v618_v18  ;;  %861 = vmatprep.mubr.f32.mxu0 %v2223_v14 }
 0x127   : > { %2106 = vmatprep.subr.msk.mxu0 %vm356_vm14, %v883_v20 }
 0x12d   : > { %2104 = vmatmul.mubr.msk.f32.vlgmr.msra.gmra.mrb[0].mxu0 %vm352_vm15, %v2101_v22 }
 0x12e   : > { %2107 = vmatpush1.msk.msra.mxu0 %vm356_vm14, %v882_v24  ;;  %961 = vmatprep.mubr.f32.mxu0 %v2223_v14  ;;  %v1201_v24 = vld [vmem:[%s2700_s3] sm:$0xf] }
 0x12f   : > { %2110 = vmatprep.subr.msk.mxu0 %vm356_vm14, %v2357_v31  ;;  %v884_v31 = vsel %vm2421_vm5, %v875_v23, %v880_v21 }
 0x135   : > { %2108 = vmatmul.mubr.msk.f32.vlgmr.msra.gmra.mrb[0].mxu0 %vm352_vm15, %v2105_v25 }
 0x136   : > { %2111 = vmatpush1.msk.msra.mxu0 %vm356_vm14, %v2353_v30  ;;  %1045 = vmatprep.mubr.f32.mxu0 %v2223_v14  ;;  %v2113_v30 = vld [vmem:[%s2698_s1 + $0x20] sm:$0xf] }
 0x137   : > { %2114 = vmatprep.subr.msk.mxu0 %vm356_vm14, %v885_v26 }
 0x13d   : > { %2112 = vmatmul.mubr.msk.f32.vlgmr.msra.gmra.mrb[0].mxu0 %vm352_vm15, %v2109_v27 }
 0x13e   : > { %2115 = vmatpush1.msk.msra.mxu0 %vm356_vm14, %v884_v31  ;;  %1129 = vmatprep.mubr.f32.mxu0 %v2223_v14 }
 0x145   : > { %2116 = vmatmul.mubr.msk.f32.vlgmr.msra.gmra.mrb[0].mxu0 %vm352_vm15, %v2113_v30 }
 0x218   : > { %v1131_v33 = vpop.f32.mrb[0].mxu0 }
 0x219   : > { %v2156_v34 = vadd.f32 %v1131_v33, %v309_v32  ;;  %v1133_v35 = vpop.f32.mrb[1].mxu0 }
 0x21a   : > { %v2157_v36 = vadd.f32 %v1133_v35, %v309_v32  ;;  %v2120_v32 = vld [vmem:[%s2700_s3 + $0x4] sm:$0xf] }
 0x21b   : > { %v1138_v37 = vsel %vm356_vm14, %v2156_v34, 0.0  ;;  %v1143_v38 = vmul.f32 %v2156_v34, %v2156_v34 }
 0x21c   : > { %v1139_v39 = vsel %vm356_vm14, %v2157_v36, 0.0  ;;  %v1144_v42 = vmul.f32 %v2157_v36, %v2157_v36 }
 0x21d   : > { %v1140_v43 = vadd.f32 %v1139_v39, %v1138_v37  ;;  %v1145_v44 = vsel %vm356_vm14, %v1143_v38, 0.0  ;;  %v2124_v38 = vld [vmem:[%s2700_s3 + $0x8] sm:$0xf] }
 0x21e   : > { %v1146_v45 = vsel %vm356_vm14, %v1144_v42, 0.0 }
 0x21f   : > { %1141 = vadd.xlane.f32.xlu1 %v1140_v43  ;;  %v1147_v46 = vadd.f32 %v1146_v45, %v1145_v44  ;;  %v2128_v45 = vld [vmem:[%s2700_s3 + $0xc] sm:$0xf] }
 0x221   : > { %1148 = vadd.xlane.f32.xlu0 %v1147_v46 }
 0x2ac   : > { %v1142_v47 = vpop.xlane.xlu1 %1141 }
 0x2ad   : > { %v1150_v48 = vmul.f32 0.00390625, %v1142_v47 }
 0x2ae   : > { %v1149_v49 = vpop.xlane.xlu0 %1148 }
 0x2af   : > { %v1151_v50 = vmul.f32 0.00390625, %v1149_v49  ;;  %v1152_v51 = vmul.f32 %v1150_v48, %v1150_v48  ;;  %v1155_v56 = vsub.f32 %v2156_v34, %v1150_v48  ;;  %v1156_v57 = vsub.f32 %v2157_v36, %v1150_v48  ;;  %v2132_v49 = vld [vmem:[%s2700_s3 + $0x10] sm:$0xf] }
 0x2b1   : > { %v1153_v53 = vsub.f32 %v1151_v50, %v1152_v51 }
 0x2b3   : > { %v1154_v54 = vmax.f32 %v1153_v53, 0.0 }
 0x2b5   : > { %v1157_v55 = vadd.f32 1e-05, %v1154_v54 }
 0x2b7   : > { %2208 = vrsqrt.f32 %v1157_v55 }
 0x2c1   : > { %v2209_v58 = vpop.eup %2208 }
 0x2c2   : > { %v1160_v59 = vmul.f32 %v2209_v58, %v1156_v57  ;;  %v1159_v60 = vmul.f32 %v2209_v58, %v1155_v56  ;;  %v2136_v56 = vld [vmem:[%s2700_s3 + $0x14] sm:$0xf] }
 0x2c4   : > { %v2515_v62 = vmax.f32 %v1160_v59, 0.0  ;;  %v2517_v63 = vmax.f32 %v1159_v60, 0.0 }
 0x2c6   : > { %1165 = vrot.lane.b32.xlu0 %v2515_v62, %s2222_s28  ;;  %1163 = vrot.lane.b32.xlu1 %v2517_v63, %s2222_s28  ;;  %s251_s28 = scalar_lea.vmem %s2703_s6, %s2154_s23 }
 0x2ca   : > { %1169 = vrot.lane.b32.xlu1 %v2517_v63, %s2221_s27 }
 0x2ce   : > { %1171 = vrot.lane.b32.xlu1 %v2515_v62, %s2221_s27 }
 0x338   : > { %v1164_v0 = vpop.permute.xlu1 %1163  ;;  %v1166_v4 = vpop.permute.xlu0 %1165 }
 0x339   : > { %v1167_v6 = vsel %vm269_vm2, %v1164_v0, %v1166_v4  ;;  %v1168_v7 = vsel %vm269_vm2, %v1166_v4, %v1164_v0 }
 0x33c   : > { %v1170_v3 = vpop.permute.xlu1 %1169 }
 0x340   : > { %v1172_v5 = vpop.permute.xlu1 %1171 }
 0x341   : > { %v1173_v8 = vsel %vm276_vm1, %v1170_v3, %v1172_v5  ;;  %v1174_v10 = vsel %vm276_vm1, %v1172_v5, %v1170_v3 }
 0x342   : > { %v1176_v11 = vsel %vm2312_vm4, %v1174_v10, %v1167_v6  ;;  %v1175_v12 = vsel %vm2308_vm3, %v1173_v8, %v1168_v7  ;;  %v2553_v15 = vsel %vm2347_vm7, %v1167_v6, %v1174_v10  ;;  %v2557_v16 = vsel %vm2343_vm6, %v1168_v7, %v1173_v8 }
 0x343   : > { %1187 = vrot.lane.b32.xlu1 %v1176_v11, %s2224_s7  ;;  %1185 = vrot.lane.b32.xlu0 %v1175_v12, %s2224_s7 }
 0x347   : > { %1193 = vrot.lane.b32.xlu1 %v1176_v11, %s2225_s8  ;;  %1191 = vrot.lane.b32.xlu0 %v1175_v12, %s2225_s8 }
 0x34b   : > { %1454 = vrot.lane.b32.xlu1 %v2515_v62, %s2224_s7  ;;  %1452 = vrot.lane.b32.xlu0 %v2517_v63, %s2224_s7 }
 0x34f   : > { %1460 = vrot.lane.b32.xlu1 %v2515_v62, %s2225_s8  ;;  %1458 = vrot.lane.b32.xlu0 %v2517_v63, %s2225_s8 }
 0x353   : > { %1722 = vrot.lane.b32.xlu1 %v2553_v15, %s2224_s7  ;;  %1720 = vrot.lane.b32.xlu0 %v2557_v16, %s2224_s7 }
 0x357   : > { %1728 = vrot.lane.b32.xlu1 %v2553_v15, %s2225_s8  ;;  %1726 = vrot.lane.b32.xlu0 %v2557_v16, %s2225_s8 }
 0x35b   : > { %1182 = vperm.xlu0 %2206, %v1179_v29  }
 0x3b5   : > { %v1188_v28 = vpop.permute.xlu1 %1187  ;;  %v1186_v2 = vpop.permute.xlu0 %1185 }
 0x3b6   : > { %v1189_v18 = vsel %vm315_vm10, %v1186_v2, %v1188_v28  ;;  %v1190_v19 = vsel %vm315_vm10, %v1188_v28, %v1186_v2 }
 0x3b9   : > { %v1194_v13 = vpop.permute.xlu1 %1193  ;;  %v1192_v17 = vpop.permute.xlu0 %1191 }
 0x3ba   : > { %v1195_v20 = vsel %vm322_vm11, %v1192_v17, %v1194_v13  ;;  %v1196_v21 = vsel %vm322_vm11, %v1194_v13, %v1192_v17 }
 0x3bb   : > { %v1198_v22 = vsel %vm2379_vm12, %v1196_v21, %v1189_v18  ;;  %v1197_v23 = vsel %vm2383_vm13, %v1195_v20, %v1190_v19  ;;  %v1200_v27 = vsel %vm2404_vm0, %v1189_v18, %v1196_v21  ;;  %v1199_v34 = vsel %vm2421_vm5, %v1190_v19, %v1195_v20 }
 0x3bc   : > { %2117 = vmatprep.subr.msk.mxu1 %vm356_vm14, %v1198_v22 }
 0x3bd   : > { %v1455_v25 = vpop.permute.xlu1 %1454  ;;  %2118 = vmatpush1.msk.msra.mxu1 %vm356_vm14, %v1197_v23  ;;  %v1453_v26 = vpop.permute.xlu0 %1452 }
 0x3be   : > { %2119 = vmatmul.mubr.msk.f32.vlgmr.msra.gmra.mrb[0].mxu1 %vm352_vm15, %v1201_v24  ;;  %2121 = vmatprep.subr.msk.mxu1 %vm356_vm14, %v1176_v11  ;;  %v1456_v35 = vsel %vm315_vm10, %v1453_v26, %v1455_v25  ;;  %v1457_v39 = vsel %vm315_vm10, %v1455_v25, %v1453_v26 }
 0x3bf   : > { %2122 = vmatpush1.msk.msra.mxu1 %vm356_vm14, %v1175_v12  ;;  %1359 = vmatprep.mubr.f32.mxu1 %v2223_v14 }
 0x3c0   : > { %2125 = vmatprep.subr.msk.mxu1 %vm356_vm14, %v1200_v27 }
 0x3c1   : > { %v1461_v31 = vpop.permute.xlu1 %1460  ;;  %v1459_v30 = vpop.permute.xlu0 %1458 }
 0x3c2   : > { %v1463_v33 = vsel %vm322_vm11, %v1461_v31, %v1459_v30  ;;  %v1462_v37 = vsel %vm322_vm11, %v1459_v30, %v1461_v31 }
 0x3c3   : > { %v1465_v36 = vsel %vm2379_vm12, %v1463_v33, %v1456_v35  ;;  %v1464_v42 = vsel %vm2383_vm13, %v1462_v37, %v1457_v39  ;;  %v1467_v46 = vsel %vm2404_vm0, %v1456_v35, %v1463_v33  ;;  %v1466_v51 = vsel %vm2421_vm5, %v1457_v39, %v1462_v37 }
 0x3c5   : > { %v1723_v43 = vpop.permute.xlu1 %1722  ;;  %v1721_v44 = vpop.permute.xlu0 %1720 }
 0x3c6   : > { %2123 = vmatmul.mubr.msk.f32.vlgmr.msra.gmra.mrb[0].mxu1 %vm352_vm15, %v2120_v32  ;;  %v1724_v53 = vsel %vm315_vm10, %v1721_v44, %v1723_v43  ;;  %v1725_v57 = vsel %vm315_vm10, %v1723_v43, %v1721_v44 }
 0x3c7   : > { %2126 = vmatpush1.msk.msra.mxu1 %vm356_vm14, %v1199_v34  ;;  %1443 = vmatprep.mubr.f32.mxu1 %v2223_v14 }
 0x3c8   : > { %2129 = vmatprep.subr.msk.mxu1 %vm356_vm14, %v1465_v36 }
 0x3c9   : > { %v1729_v47 = vpop.permute.xlu1 %1728  ;;  %v1727_v48 = vpop.permute.xlu0 %1726 }
 0x3ca   : > { %v1731_v50 = vsel %vm322_vm11, %v1729_v47, %v1727_v48  ;;  %v1730_v55 = vsel %vm322_vm11, %v1727_v48, %v1729_v47 }
 0x3cb   : > { %v1733_v54 = vsel %vm2379_vm12, %v1731_v50, %v1724_v53  ;;  %v1732_v58 = vsel %vm2383_vm13, %v1730_v55, %v1725_v57  ;;  %v1735_v9 = vsel %vm2404_vm0, %v1724_v53, %v1731_v50  ;;  %v1734_v59 = vsel %vm2421_vm5, %v1725_v57, %v1730_v55 }
 0x3ce   : > { %2127 = vmatmul.mubr.msk.f32.vlgmr.msra.gmra.mrb[0].mxu1 %vm352_vm15, %v2124_v38 }
 0x3cf   : > { %2130 = vmatpush1.msk.msra.mxu1 %vm356_vm14, %v1464_v42  ;;  %1543 = vmatprep.mubr.f32.mxu1 %v2223_v14 }
 0x3d0   : > { %2133 = vmatprep.subr.msk.mxu1 %vm356_vm14, %v2515_v62 }
 0x3d6   : > { %2131 = vmatmul.mubr.msk.f32.vlgmr.msra.gmra.mrb[0].mxu1 %vm352_vm15, %v2128_v45 }
 0x3d7   : > { %2134 = vmatpush1.msk.msra.mxu1 %vm356_vm14, %v2517_v63  ;;  %1627 = vmatprep.mubr.f32.mxu1 %v2223_v14 }
 0x3d8   : > { %2137 = vmatprep.subr.msk.mxu1 %vm356_vm14, %v1467_v46 }
 0x3da   : > { %v1183_v60 = vpop.permute.xlu0 %1182 }
 0x3de   : > { %2135 = vmatmul.mubr.msk.f32.vlgmr.msra.gmra.mrb[0].mxu1 %vm352_vm15, %v2132_v49 }
 0x3df   : > { %2138 = vmatpush1.msk.msra.mxu1 %vm356_vm14, %v1466_v51  ;;  %1711 = vmatprep.mubr.f32.mxu1 %v2223_v14 }
 0x3e0   : > { %2141 = vmatprep.subr.msk.mxu1 %vm356_vm14, %v1733_v54 }
 0x3e6   : > { %2139 = vmatmul.mubr.msk.f32.vlgmr.msra.gmra.mrb[0].mxu1 %vm352_vm15, %v2136_v56 }
 0x3e7   : > { %2142 = vmatpush1.msk.msra.mxu1 %vm356_vm14, %v1732_v58  ;;  %1811 = vmatprep.mubr.f32.mxu1 %v2223_v14 }
 0x3e8   : > { %2145 = vmatprep.subr.msk.mxu1 %vm356_vm14, %v2553_v15 }
 0x3ee   : > { %2143 = vmatmul.mubr.msk.f32.vlgmr.msra.gmra.mrb[0].mxu1 %vm352_vm15, %v2140_v40 }
 0x3ef   : > { %2146 = vmatpush1.msk.msra.mxu1 %vm356_vm14, %v2557_v16  ;;  %1895 = vmatprep.mubr.f32.mxu1 %v2223_v14 }
 0x3f0   : > { %2149 = vmatprep.subr.msk.mxu1 %vm356_vm14, %v1735_v9 }
 0x3f6   : > { %2147 = vmatmul.mubr.msk.f32.vlgmr.msra.gmra.mrb[0].mxu1 %vm352_vm15, %v2144_v41 }
 0x3f7   : > { %2150 = vmatpush1.msk.msra.mxu1 %vm356_vm14, %v1734_v59  ;;  %1979 = vmatprep.mubr.f32.mxu1 %v2223_v14 }
 0x3fe   : > { %2151 = vmatmul.mubr.msk.f32.vlgmr.msra.gmra.mrb[0].mxu1 %vm352_vm15, %v2148_v52 }
 0x4d1   : > { %v1981_v62 = vpop.f32.mrb[0].mxu1 }
 0x4d2   : > { %v2158_v63 = vadd.f32 %v1981_v62, %v1183_v60  ;;  %v1983_v0 = vpop.f32.mrb[1].mxu1 }
 0x4d3   : > { %v2159_v3 = vadd.f32 %v1983_v0, %v1183_v60 }
 0x4d4   : > { %v1988_v61 = vsel %vm356_vm14, %v2158_v63, 0.0  ;;  %v1993_v4 = vmul.f32 %v2158_v63, %v2158_v63 }
 0x4d5   : > { %v1989_v5 = vsel %vm356_vm14, %v2159_v3, 0.0  ;;  %v1994_v6 = vmul.f32 %v2159_v3, %v2159_v3 }
 0x4d6   : > { %v1990_v7 = vadd.f32 %v1989_v5, %v1988_v61  ;;  %v1995_v14 = vsel %vm356_vm14, %v1993_v4, 0.0 }
 0x4d7   : > { %v1996_v8 = vsel %vm356_vm14, %v1994_v6, 0.0 }
 0x4d8   : > { %1991 = vadd.xlane.f32.xlu1 %v1990_v7  ;;  %v1997_v10 = vadd.f32 %v1996_v8, %v1995_v14 }
 0x4da   : > { %1998 = vadd.xlane.f32.xlu0 %v1997_v10 }
 0x565   : > { %v1992_v11 = vpop.xlane.xlu1 %1991 }
 0x566   : > { %v2000_v12 = vmul.f32 0.00390625, %v1992_v11 }
 0x567   : > { %v1999_v15 = vpop.xlane.xlu0 %1998 }
 0x568   : > { %v2001_v16 = vmul.f32 0.00390625, %v1999_v15  ;;  %v2002_v29 = vmul.f32 %v2000_v12, %v2000_v12  ;;  %v2005_v17 = vsub.f32 %v2158_v63, %v2000_v12  ;;  %v2006_v18 = vsub.f32 %v2159_v3, %v2000_v12 }
 0x56a   : > { %v2003_v28 = vsub.f32 %v2001_v16, %v2002_v29 }
 0x56c   : > { %v2004_v2 = vmax.f32 %v2003_v28, 0.0 }
 0x56e   : > { %v2007_v13 = vadd.f32 1e-05, %v2004_v2 }
 0x570   : > { %2210 = vrsqrt.f32 %v2007_v13 }
 0x57a   : > { %v2211_v19 = vpop.eup %2210 }
 0x57b   : > { %v2009_v20 = vmul.f32 %v2211_v19, %v2005_v17  ;;  %v2010_v21 = vmul.f32 %v2211_v19, %v2006_v18 }
 0x57d   : > { %v2013_v22 = vcombine.low %v2009_v20, %v2010_v21 }
 0x57f   : > { %v2015_v23 = vadd.f32 %v2013_v22, %v2278_v1 }
 0x581   : > { %2016 = vst [vmem:[%s251_s28] sm:$0xff] %v2015_v23 }
 0x582 PF: > { %s16_s21 = sadd.s32 1, %s2218_s21  }
 0x583   : > { %p13_p4 = scmp.ge.s32.totalorder %s16_s21, 4  }
 0x585   :  { %15 = sbr.rel (!%p13_p4) target bundleno = 1 (0x1), region = 91 }

</bundles_post_ra>
